<compile_context>
chip_gen: v6e
topology: v6e:2x2x1
jax: 0.10.0
libtpu: 0.0.40
codegen_flags: <defaults>
</compile_context>

<pallas_src>
import functools
import math

import jax
import jax.numpy as jnp
import numpy as np
from jax import lax
from jax.experimental import pallas as pl
from jax.experimental.pallas import tpu as pltpu


_TB_MAX = 2048  # batch-tile rows (multiple of 8); ~0.5 MB/input/tile at N=60 in f32


def _combo_kernel(*refs, mse_scale, batch_rows, tile_rows, use_w, mm_bf16,
                  mask_tail, reduce_all):
    if use_w:
        ya_ref, yp_ref, tri_ref, w_ref, out_ref = refs
    else:
        ya_ref, yp_ref, tri_ref, out_ref = refs
        w_ref = None

    ya = ya_ref[...].astype(jnp.float32)          # (TB, N)
    yp = yp_ref[...].astype(jnp.float32)          # (TB, N)
    diff = ya - yp                                # reused by both terms

    # cumsum along axis=1 as an MXU matmul with a precomputed upper-triangular matrix.
    # f32 path: tri carries the folded trapezoid weights (w >= 0).  bf16 path: tri is exact 0/1.
    mm_lhs = diff.astype(jnp.bfloat16) if mm_bf16 else diff
    cdf = jnp.dot(mm_lhs, tri_ref[...], preferred_element_type=jnp.float32)  # (TB, N)

    wass_term = jnp.abs(cdf)
    if use_w:                                     # bf16 path: apply f32 weights separately
        wass_term = w_ref[...] * wass_term        # (1,N) broadcast over (TB,N)
    fused = wass_term + jnp.float32(mse_scale) * (diff * diff)

    if mask_tail:                                 # compile-time gated: only when B % TB != 0
        row = lax.broadcasted_iota(jnp.int32, fused.shape, 0)
        valid = (pl.program_id(0) * tile_rows + row) < batch_rows
        fused = jnp.where(valid, fused, jnp.float32(0.0))

    # Reduce over the batch axis only (VPU adds + one sublane reduce); keep lanes intact so
    # the expensive cross-lane reduce is deferred out of the per-block hot path.
    partial = jnp.sum(fused, axis=0, keepdims=True)          # (1, N)
    if reduce_all:
        out_ref[...] = jnp.sum(partial, axis=1, keepdims=True)   # (1, 1) scalar loss
    else:
        out_ref[...] = partial.reshape(1, 1, partial.shape[-1])  # (1, 1, N) per-block partial


@functools.lru_cache(maxsize=None)
def _host_constants(N, B, min_T2, max_T2, mse_weight, bf16_matmul):
    """Cached per-(shape, params, dtype) constants."""
    arr = np.logspace(math.log10(min_T2), math.log10(max_T2),
                      num=N, endpoint=True, base=10.0)
    dw = np.diff(arr)                                  # (N-1,)
    assert np.all(dw > 0.0), "logspace must be strictly increasing (needed to fold |.|)"
    # Fold trapezoid rule into per-index weights, then fold 0.5 and the 1/B batch mean.
    w = np.zeros((1, N), dtype=np.float64)
    w[0, :-1] += dw
    w[0, 1:] += dw
    w *= 0.5 / float(B)
    row, col = np.indices((N, N))
    tri = (row <= col).astype(np.float64)              # tri[k, j] = 1 iff k <= j
    mse_scale = float(mse_weight) / float(B * N)
    if bf16_matmul:
        # Keep tri exact 0/1 in bf16; weights applied separately in f32 inside the kernel.
        return (jnp.asarray(tri.astype(np.float32), dtype=jnp.bfloat16),
                jnp.asarray(w.astype(np.float32)), mse_scale)
    # f32 path: fold weights into tri columns (exact since w >= 0), drop the w input.
    tri_w = (tri * w).astype(np.float32)
    return jnp.asarray(tri_w), None, mse_scale


def mse_wasserstein_combo(y_actual, y_pred, mse_weight=100000.0,
                          min_T2=10.0, max_T2=2000.0, tile_rows=None):
    """Pallas equivalent of MSE_wasserstein_combo.forward (returns a scalar)."""
    B, N = y_actual.shape
    bf16_matmul = (y_actual.dtype == jnp.bfloat16 and y_pred.dtype == jnp.bfloat16)
    tri_mat, w_vec, mse_scale = _host_constants(
        int(N), int(B), float(min_T2), float(max_T2), float(mse_weight), bool(bf16_matmul))

    tb_max = _TB_MAX if tile_rows is None else int(tile_rows)
    if B <= tb_max:
        TB = B                                   # single full-extent block
    else:
        TB = max(8, (tb_max // 8) * 8)           # keep sublane-aligned tiles
    num_blocks = pl.cdiv(B, TB)
    mask_tail = (B % TB) != 0                    # tail block masked in-kernel (no jnp.pad copy)
    reduce_all = (num_blocks == 1)
    use_w = bf16_matmul

    inputs = [y_actual, y_pred, tri_mat]
    in_specs = [
        pl.BlockSpec((TB, N), lambda i: (i, 0)),   # y_actual tile (native dtype)
        pl.BlockSpec((TB, N), lambda i: (i, 0)),   # y_pred tile (native dtype)
        pl.BlockSpec((N, N), lambda i: (0, 0)),    # tri / tri_w matrix
    ]
    if use_w:
        inputs.append(w_vec)
        in_specs.append(pl.BlockSpec((1, N), lambda i: (0, 0)))

    if reduce_all:
        out_shape = jax.ShapeDtypeStruct((1, 1), jnp.float32)
        out_spec = pl.BlockSpec((1, 1), lambda i: (0, 0))
    else:
        # Independent per-block partials: grid axis is "parallel" (both TCs on v7x),
        # no serial accumulator chain, better f32 conditioning for large B.
        out_shape = jax.ShapeDtypeStruct((num_blocks, 1, N), jnp.float32)
        out_spec = pl.BlockSpec((1, 1, N), lambda i: (i, 0, 0))

    kernel = functools.partial(
        _combo_kernel, mse_scale=mse_scale, batch_rows=int(B), tile_rows=int(TB),
        use_w=use_w, mm_bf16=bf16_matmul, mask_tail=mask_tail, reduce_all=reduce_all)

    out = pl.pallas_call(
        kernel,
        out_shape=out_shape,
        grid=(num_blocks,),
        in_specs=in_specs,
        out_specs=out_spec,
        compiler_params=pltpu.CompilerParams(dimension_semantics=("parallel",)),
    )(*inputs)

    if reduce_all:
        return out[0, 0]
    return jnp.sum(out)   # tiny (num_blocks*N) reduce; only on the multi-block path


def _reference(y_actual, y_pred, mse_weight=100000.0, min_T2=10.0, max_T2=2000.0):
    """Pure-JAX reference mirroring the PyTorch code exactly (f32 math)."""
    y_actual = y_actual.astype(jnp.float32)
    y_pred = y_pred.astype(jnp.float32)
    B, N = y_actual.shape
    arr = np.logspace(math.log10(min_T2), math.log10(max_T2),
                      num=N, endpoint=True, base=10.0).astype(np.float32)
    arr_t = jnp.asarray(np.tile(arr, (B, 1)))
    abs_cdf = jnp.abs(jnp.cumsum(y_actual - y_pred, axis=1))
    wass = jnp.mean(0.5 * jnp.sum((-arr_t[:, :-1] + arr_t[:, 1:]) *
                                  (abs_cdf[:, :-1] + abs_cdf[:, 1:]), axis=1))
    mse = jnp.mean((y_pred - y_actual) ** 2)
    return wass + mse_weight * mse


if __name__ == "__main__":
    key = jax.random.PRNGKey(0)
    k1, k2, k3, k4 = jax.random.split(key, 4)
    N = 60  # num_samples=60 per the module default

    # Case 1: default-size f32 inputs (B=8) -> single block, f32 matmul with folded weights.
    B = 8
    ya = jax.nn.softmax(jax.random.normal(k1, (B, N), dtype=jnp.float32), axis=1)
    yp = jax.nn.softmax(jax.random.normal(k2, (B, N), dtype=jnp.float32), axis=1)
    loss = jax.block_until_ready(mse_wasserstein_combo(ya, yp))
    ref = jax.block_until_ready(_reference(ya, yp))
    assert np.isfinite(float(loss))
    assert abs(float(loss) - float(ref)) <= 1e-3 * max(1.0, abs(float(ref))), (loss, ref)

    # Case 2: multi-block path with a masked tail (B=20, forced tile of 8 -> 3 blocks,
    # last block has 4 out-of-range rows masked in-kernel; parallel per-block partials).
    B2 = 20
    ya2 = jax.nn.softmax(jax.random.normal(k3, (B2, N), dtype=jnp.float32), axis=1)
    yp2 = jax.nn.softmax(jax.random.normal(k4, (B2, N), dtype=jnp.float32), axis=1)
    loss2 = jax.block_until_ready(mse_wasserstein_combo(ya2, yp2, tile_rows=8))
    ref2 = jax.block_until_ready(_reference(ya2, yp2))
    assert abs(float(loss2) - float(ref2)) <= 1e-3 * max(1.0, abs(float(ref2))), (loss2, ref2)

    # Case 3: bf16 inputs exercise the bf16-MXU / halved-DMA path (key lever on v5e).
    ya3 = ya.astype(jnp.bfloat16)
    yp3 = yp.astype(jnp.bfloat16)
    loss3 = jax.block_until_ready(mse_wasserstein_combo(ya3, yp3))
    ref3 = jax.block_until_ready(_reference(ya3, yp3))  # same bf16 data, f32 reference math
    assert abs(float(loss3) - float(ref3)) <= 2e-2 * max(1.0, abs(float(ref3))), (loss3, ref3)

    print("KERNEL_OK")
</pallas_src>

<mosaic_0001>
module attributes {stable_mosaic.version = 11 : i64} {
  func.func @_combo_kernel(%arg0: i32, %arg1: memref<8x60xf32, #tpu.memory_space<vmem>>, %arg2: memref<8x60xf32, #tpu.memory_space<vmem>>, %arg3: memref<60x60xf32, #tpu.memory_space<vmem>>, %arg4: memref<1x1xf32, #tpu.memory_space<vmem>>) attributes {dimension_semantics = [#tpu.dimension_semantics<parallel>], iteration_bounds = array<i64: 1>, scalar_prefetch = 0 : i64, scratch_operands = 0 : i64, tpu.core_type = #tpu.core_type<tc>, window_params = [{transform_indices = @transform_0, window_bounds = array<i64: 8, 60>}, {transform_indices = @transform_1, window_bounds = array<i64: 8, 60>}, {pipeline_mode = #tpu.pipeline_mode<synchronous>, transform_indices = @transform_2, window_bounds = array<i64: 60, 60>}, {pipeline_mode = #tpu.pipeline_mode<synchronous>, transform_indices = @transform_3, window_bounds = array<i64: 1, 1>}]} {
    %c0 = arith.constant 0 : index
    %c0_0 = arith.constant 0 : index
    %0 = vector.load %arg1[%c0, %c0_0] : memref<8x60xf32, #tpu.memory_space<vmem>>, vector<8x60xf32>
    %c0_1 = arith.constant 0 : index
    %c0_2 = arith.constant 0 : index
    %1 = vector.load %arg2[%c0_1, %c0_2] : memref<8x60xf32, #tpu.memory_space<vmem>>, vector<8x60xf32>
    %2 = arith.subf %0, %1 : vector<8x60xf32>
    %c0_3 = arith.constant 0 : index
    %c0_4 = arith.constant 0 : index
    %3 = vector.load %arg3[%c0_3, %c0_4] : memref<60x60xf32, #tpu.memory_space<vmem>>, vector<60x60xf32>
    %cst = arith.constant dense<0.000000e+00> : vector<8x60xf32>
    %4 = tpu.matmul %2, %3, %cst {dimension_numbers = #tpu.dot_dimension_numbers<[1], [0], [0], [1], [0, 0, 1, 1], [], []>} : vector<8x60xf32>, vector<60x60xf32>, vector<8x60xf32> -> vector<8x60xf32>
    %5 = math.absf %4 : vector<8x60xf32>
    %6 = arith.mulf %2, %2 : vector<8x60xf32>
    %cst_5 = arith.constant 208.333328 : f32
    %7 = vector.broadcast %cst_5 : f32 to vector<8x60xf32>
    %8 = arith.mulf %7, %6 : vector<8x60xf32>
    %9 = arith.addf %5, %8 : vector<8x60xf32>
    %cst_6 = arith.constant dense<0.000000e+00> : vector<60xf32>
    %10 = vector.multi_reduction <add>, %9, %cst_6 [0] : vector<8x60xf32> to vector<60xf32>
    %11 = vector.shape_cast %10 : vector<60xf32> to vector<1x60xf32>
    %cst_7 = arith.constant dense<0.000000e+00> : vector<1xf32>
    %12 = vector.multi_reduction <add>, %11, %cst_7 [1] : vector<1x60xf32> to vector<1xf32>
    %13 = vector.shape_cast %12 : vector<1xf32> to vector<1x1xf32>
    %c0_8 = arith.constant 0 : index
    %c0_9 = arith.constant 0 : index
    %14 = vector.load %arg4[%c0_8, %c0_9] : memref<1x1xf32, #tpu.memory_space<vmem>>, vector<1x1xf32>
    tpu.vector_store %arg4[%c0_8, %c0_9], %13 {strides = array<i32>} : memref<1x1xf32, #tpu.memory_space<vmem>>, vector<1x1xf32>,
    return
  }
  func.func @transform_0(%arg0: i32) -> (i32, i32) {
    %c0_i32 = arith.constant 0 : i32
    %c0_i32_0 = arith.constant 0 : i32
    return %arg0, %c0_i32 : i32, i32
  }
  func.func @transform_1(%arg0: i32) -> (i32, i32) {
    %c0_i32 = arith.constant 0 : i32
    %c0_i32_0 = arith.constant 0 : i32
    return %arg0, %c0_i32 : i32, i32
  }
  func.func @transform_2(%arg0: i32) -> (i32, i32) {
    %c0_i32 = arith.constant 0 : i32
    %c0_i32_0 = arith.constant 0 : i32
    %c0_i32_1 = arith.constant 0 : i32
    return %c0_i32, %c0_i32_0 : i32, i32
  }
  func.func @transform_3(%arg0: i32) -> (i32, i32) {
    %c0_i32 = arith.constant 0 : i32
    %c0_i32_0 = arith.constant 0 : i32
    %c0_i32_1 = arith.constant 0 : i32
    return %c0_i32, %c0_i32_0 : i32, i32
  }
}

</mosaic_0001>

<bundles_post_ra>
// kernel: tpu_custom_call.1
= control target key start
LH: loop header
LB: loop body
LE: loop exit
PB: predicated region body
PF: predicated region fallthrough
CT: control target
= control target key end

     0   :  { %8 = vsyncpa [#allocation3], 0  ;;  %s340_s0 = inlined_call_operand.hbm [shape: f32[8,60], index: 0, kind: input, shape index: {}]   ;;  %s341_s1 = inlined_call_operand.hbm [shape: f32[8,60], index: 1, kind: input, shape index: {}]   ;;  %s342_s2 = inlined_call_operand.hbm [shape: f32[60,60], index: 2, kind: input, shape index: {}]   ;;  %s343_s3 = inlined_call_operand.hbm [shape: f32[1,1], index: 3, kind: output, shape index: {}]  }
   0x1   :  { %9 = vsyncpa [#allocation6], 0 }
   0x2   :  { %10 = vsyncpa [#allocation4], 0  ;;  %s297_s12 = smov [#allocation5]   ;;  %s298_s14 = smov [#allocation2]  }
   0x3   :  { %s27_s13 = sshll.u32 %s297_s12, 4  ;;  %s17_s15 = sshll.u32 %s298_s14, 4  ;;  %s28_s13 = int_to_ptr.vmem [resolvable:$true] %s27_s13  ;;  %s18_s15 = int_to_ptr.vmem [resolvable:$true] %s17_s15 }
   0x4   :  { %s219_s16 = scalar_lea.vmem %s28_s13, 128  ;;  %p224_p1 = scmp.lt.s32.totalorder %s28_s13, %s28_s13 }
   0x5   :  { %p220_p0 = scmp.ne.s32.totalorder %s28_s13, %s219_s16  ;;  %p225_p2 = scmp.lt.s32.totalorder %s219_s16, %s219_s16 }
   0x7   :  { %p226_p3 = por %p225_p2, %p224_p1 }
   0x9   :  { %p227_p4 = pnand %p226_p3, %p220_p0 }
   0xb   :  { %230 = shalt.err (!%p227_p4)
}
   0xc   :  { %30 = dma.hbm_to_vmem [thread:$0]  %s341_s1, 128, %s28_s13, [#allocation6]  }
   0xd   :  { %s239_s19 = scalar_lea.vmem %s18_s15, 128  ;;  %p244_p6 = scmp.lt.s32.totalorder %s18_s15, %s18_s15 }
   0xe   :  { %p240_p5 = scmp.ne.s32.totalorder %s18_s15, %s239_s19  ;;  %p245_p7 = scmp.lt.s32.totalorder %s239_s19, %s239_s19 }
  0x10   :  { %p246_p8 = por %p245_p7, %p244_p6 }
  0x12   :  { %p247_p9 = pnand %p246_p8, %p240_p5 }
  0x14   :  { %250 = shalt.err (!%p247_p9)
}
  0x15   :  { %20 = dma.hbm_to_vmem [thread:$0]  %s340_s0, 128, %s18_s15, [#allocation3]  }
  0x16   :  { %s299_s22 = smov [#allocation7]  }
  0x17   :  { %s36_s23 = sshll.u32 %s299_s22, 4  ;;  %s37_s23 = int_to_ptr.vmem [resolvable:$true] %s36_s23 }
  0x18   :  { %s259_s24 = scalar_lea.vmem %s37_s23, 1024  ;;  %p264_p11 = scmp.lt.s32.totalorder %s37_s23, %s37_s23 }
  0x19   :  { %p260_p10 = scmp.ne.s32.totalorder %s37_s23, %s259_s24  ;;  %p265_p12 = scmp.lt.s32.totalorder %s259_s24, %s259_s24 }
  0x1b   :  { %p266_p13 = por %p265_p12, %p264_p11 }
  0x1d   :  { %p267_p0 = pnand %p266_p13, %p260_p10 }
  0x1f   :  { %270 = shalt.err (!%p267_p0)
}
  0x20   :  { %s300_s1 = smov 128   ;;  %s301_s25 = smov 8  }
  0x21   :  { %42 = dma.hbm_to_vmem [thread:$0]  %s342_s2, 1024, %s37_s23, [#allocation6], %s300_s1, %s300_s1, %s301_s25  }
  0x22   :  { %291 = dma.done.wait [#allocation3], 128  }
  0x23   :  { %292 = vsyncadd [#allocation3], 4294967168 }
  0x24   :  { %293 = dma.done.wait [#allocation6], 1152  }
  0x25   :  { %294 = vsyncadd [#allocation6], 4294966144  ;;  %v302_v0 = vmov 0.0   ;;  %vm303_vm0 = vmmov 0   ;;  %vm67_vm1 = vcmask 1043456   ;;  %v61_v2 = vld [vmem:[#allocation7 + $0x30] sm:$0xff] }
  0x26   :  { %184 = vmatprep.subr.mxu0 %v302_v0  ;;  %200 = vmatprep.mubr.msk.f32.mxu0 %vm303_vm0, %v302_v0  ;;  %v62_v1 = vld [vmem:[#allocation7 + $0x38] sm:$0xf]  ;;  %v60_v3 = vld [vmem:[#allocation7 + $0x28] sm:$0xff]  ;;  %v59_v4 = vld [vmem:[#allocation7 + $0x20] sm:$0xff]  ;;  %vm63_vm2 = vcmask 490496   ;;  %s304_s0 = smov [#allocation8]  }
  0x27   :  { %185 = vmatpush3.msk.msra.mxu0 %vm67_vm1, %v62_v1  ;;  %v58_v5 = vld [vmem:[#allocation7 + $0x18] sm:$0xff]  ;;  %v57_v6 = vld [vmem:[#allocation7 + $0x10] sm:$0xff]  ;;  %v56_v9 = vld [vmem:[#allocation7 + $0x8] sm:$0xff]  ;;  %s163_s2 = sshll.u32 %s304_s0, 4  ;;  %vm155_vm3 = vcmask 0   ;;  %s164_s2 = int_to_ptr.vmem [resolvable:$true] %s163_s2 }
  0x28   :  { %186 = vmatprep.subr.mxu0 %v302_v0  ;;  %v52_v7 = vld [vmem:[#allocation2] sm:$0xff]  ;;  %v53_v8 = vld [vmem:[#allocation5] sm:$0xff]  ;;  %v55_v10 = vld [vmem:[#allocation7] sm:$0xff]  ;;  %s271_s28 = scalar_lea.vmem %s164_s2, 16  ;;  %s275_s29 = scalar_lea.vmem %s164_s2, 32 }
  0x29   :  { %187 = vmatpush3.msra.mxu0 %v61_v2  ;;  %v54_v11 = vsub.f32 %v52_v7, %v53_v8  ;;  %p272_p1 = scmp.ne.s32.totalorder %s164_s2, %s271_s28  ;;  %p276_p2 = scmp.lt.s32.totalorder %s164_s2, %s164_s2 }
  0x2a   :  { %188 = vmatprep.subr.mxu0 %v302_v0  ;;  %p277_p3 = scmp.lt.s32.totalorder %s275_s29, %s271_s28 }
  0x2b   :  { %189 = vmatpush3.msra.mxu0 %v60_v3  ;;  %v142_v12 = vmul.f32 %v54_v11, %v54_v11 }
  0x2c   :  { %190 = vmatprep.subr.mxu0 %v302_v0  ;;  %p278_p4 = por %p277_p3, %p276_p2 }
  0x2d   :  { %191 = vmatpush3.msra.mxu0 %v59_v4  ;;  %v143_v13 = vmul.f32 208.33333, %v142_v12 }
  0x2e   :  { %192 = vmatprep.subr.mxu0 %v302_v0  ;;  %p279_p5 = pnand %p278_p4, %p272_p1 }
  0x2f   :  { %193 = vmatpush3.msra.mxu0 %v58_v5 }
  0x30   :  { %194 = vmatprep.subr.mxu0 %v302_v0 }
  0x31   :  { %195 = vmatpush3.msra.mxu0 %v57_v6 }
  0x32   :  { %196 = vmatprep.subr.mxu0 %v302_v0 }
  0x33   :  { %197 = vmatpush3.msra.mxu0 %v56_v9 }
  0x34   :  { %198 = vmatprep.subr.mxu0 %v302_v0 }
  0x35   :  { %199 = vmatpush3.msra.mxu0 %v55_v10 }
  0x36   :  { %201 = vmatmul.mubr.msk.f32.vlgmr.msra.gmra.mxu0 %vm63_vm2, %v54_v11 }
  0xf6   :  { %v137_v14 = vpop.f32.mrf.mxu0 }
  0xf7   :  { %v141_v15 = vand.u32 2147483647, %v137_v14 }
  0xf8   :  { %v202_v16 = vpop.f32.mrf.mxu0 }
  0xf9   :  { %v144_v17 = vadd.f32 %v143_v13, %v141_v15 }
  0xfb   :  { %v145_v18 = vsel %vm63_vm2, %v144_v17, 0.0 }
  0xfc   :  { %v146_v19 = vrot.slane %v145_v18, 4 }
  0xfe   :  { %v147_v20 = vadd.f32 %v146_v19, %v145_v18 }
 0x100   :  { %v148_v21 = vrot.slane %v147_v20, 2 }
 0x102   :  { %v149_v22 = vadd.f32 %v148_v21, %v147_v20 }
 0x104   :  { %v150_v23 = vrot.slane %v149_v22, 1 }
 0x106   :  { %v151_v24 = vadd.f32 %v150_v23, %v149_v22 }
 0x108   :  { %v152_v25 = vsel %vm63_vm2, %v151_v24, 0.0 }
 0x109   :  { %153 = vadd.xlane.f32.xlu0 %v152_v25 }
 0x192   :  { %v154_v26 = vpop.xlane.xlu0 %153 }
 0x193   :  { %156 = vst.msk [vmem:[#allocation8] sm:$0x1] %vm155_vm3, %v154_v26 }
 0x194   :  { %282 = shalt.err (!%p279_p5)
}
 0x195   :  { %166 = dma.vmem_to_hbm [thread:$0]  %s164_s2, 16, %s343_s3, [#allocation4]  }
 0x196   :  { %295 = dma.done.wait [#allocation4], 16  }
 0x197   :  { %296 = vsyncadd [#allocation4], 4294967280 }
 0x198   :  { %170 = vsyncpa [#allocation3], 1 }
 0x199   :  { %171 = vsyncpa [#allocation6], 1 }
 0x19a   :  { %172 = vsyncpa [#allocation4], 1 }

</bundles_post_ra>
